<compile_context>
chip_gen: v7x
topology: tpu7x:2x2x1
jax: 0.10.0
libtpu: 0.0.40
codegen_flags: <defaults>
</compile_context>

<pallas_src>
import math

import jax
import jax.numpy as jnp
from jax import lax
from jax.experimental import pallas as pl
from jax.experimental.pallas import tpu as pltpu

# ----------------------------- config (small) -------------------------------
HIDDEN = 32
NUM_HEADS = 4
HEAD_DIM = HIDDEN // NUM_HEADS          # 8
HALF = HEAD_DIM // 2                    # 4
NUM_KV_HEADS = 2
KV_GROUPS = NUM_HEADS // NUM_KV_HEADS   # 2
ROPE_THETA = 10000.0
BATCH = 2
SEQ = 8
DTYPE = jnp.float32

QH = NUM_HEADS * HALF                   # 16  (q first-half / second-half slab width)
KH = NUM_KV_HEADS * HALF                # 8   (k first-half / second-half slab width)
VW = NUM_KV_HEADS * HEAD_DIM            # 16  (v slab width, original head layout)
QKV_W = 2 * QH + 2 * KH + VW            # 64  (fused projection width)
KV_OUT_W = 2 * KH + VW                  # 32  (post-RoPE K | V output width)


# ------------------------------ Pallas kernel --------------------------------
def fused_qwen2_attention_kernel(x_ref, wqkv_ref, bqkv_ref, wo_ref,
                                 cosq_ref, sinq_ref, cosk_ref, sink_ref,
                                 out_ref, kv_ref):
    """One batch element per grid step.

    x_ref    : (S, H)                    f32 activations
    wqkv_ref : (H, QKV_W)                bf16, columns = [Q1|Q2|K1|K2|V]
    bqkv_ref : (1, QKV_W)                f32 bias in the same column layout
    wo_ref   : (NH*D, H)                 bf16
    cosq/sinq: (S, QH)                   f32, tiled per q head, pre-scaled 1/sqrt(D)
    cosk/sink: (S, KH)                   f32, tiled per kv head
    out_ref  : (S, H)                    attention output after o_proj
    kv_ref   : (S, KV_OUT_W)             post-RoPE K (split-half layout) | V
    """
    S = x_ref.shape[0]

    # ---- fused QKV projection: bf16 MXU operands, f32 accumulate + bias ----
    qkv = jnp.dot(x_ref[...].astype(jnp.bfloat16), wqkv_ref[...],
                  preferred_element_type=jnp.float32) + bqkv_ref[...]

    # ---- lane-dense slab RoPE (split-half column layout, f32 elementwise) ----
    q1 = qkv[:, 0:QH]
    q2 = qkv[:, QH:2 * QH]
    k1 = qkv[:, 2 * QH:2 * QH + KH]
    k2 = qkv[:, 2 * QH + KH:2 * QH + 2 * KH]
    v_slab = qkv[:, 2 * QH + 2 * KH:]

    cq = cosq_ref[...]
    sq = sinq_ref[...]
    ck = cosk_ref[...]
    sk = sink_ref[...]

    qr1 = q1 * cq - q2 * sq            # already scaled by 1/sqrt(D) via tables
    qr2 = q2 * cq + q1 * sq
    kr1 = k1 * ck - k2 * sk
    kr2 = k2 * ck + k1 * sk

    # post-RoPE K | V written out once, lane-dense full-width store
    kv_ref[...] = jnp.concatenate([kr1, kr2, v_slab], axis=-1).astype(kv_ref.dtype)

    # bf16 MXU operand slabs (cast once, sliced per head below)
    qr1b = qr1.astype(jnp.bfloat16)
    qr2b = qr2.astype(jnp.bfloat16)
    kr1b = kr1.astype(jnp.bfloat16)
    kr2b = kr2.astype(jnp.bfloat16)
    vb = v_slab.astype(jnp.bfloat16)

    # causal additive mask generated in-kernel (hoisted out of the head loops)
    row = lax.broadcasted_iota(jnp.int32, (S, S), 0)
    col = lax.broadcasted_iota(jnp.int32, (S, S), 1)
    bias = jnp.where(col <= row, 0.0, -1e9).astype(jnp.float32)

    dn = (((1,), (1,)), ((), ()))      # contract last dims (Q @ K^T)
    head_out = []
    # TODO(synk): at real head counts turn these short static loops into grid
    # axes / lax.fori_loop(..., unroll=True) to bound vreg live ranges.
    for kvh in range(NUM_KV_HEADS):
        kr1h = kr1b[:, kvh * HALF:(kvh + 1) * HALF]
        kr2h = kr2b[:, kvh * HALF:(kvh + 1) * HALF]
        vh = vb[:, kvh * HEAD_DIM:(kvh + 1) * HEAD_DIM]
        for g in range(KV_GROUPS):
            h = kvh * KV_GROUPS + g                     # GQA: q head -> kv head
            qr1h = qr1b[:, h * HALF:(h + 1) * HALF]
            qr2h = qr2b[:, h * HALF:(h + 1) * HALF]
            # scores = q_rot @ k_rot^T as the sum of the two half contractions
            scores = (lax.dot_general(qr1h, kr1h, dn,
                                      preferred_element_type=jnp.float32)
                      + lax.dot_general(qr2h, kr2h, dn,
                                        preferred_element_type=jnp.float32)
                      + bias)
            # softmax in f32 (matches torch softmax(dtype=float32))
            m = jnp.max(scores, axis=-1, keepdims=True)
            p = jnp.exp(scores - m)
            l = jnp.sum(p, axis=-1, keepdims=True)
            p = p * pl.reciprocal(l, approx=True)
            head_out.append(jnp.dot(p.astype(jnp.bfloat16), vh,
                                    preferred_element_type=jnp.float32))

    # one fused o_proj matmul over the full (S, NH*D) attention slab
    attn_slab = jnp.concatenate(head_out, axis=-1)
    out = jnp.dot(attn_slab.astype(jnp.bfloat16), wo_ref[...],
                  preferred_element_type=jnp.float32)
    out_ref[...] = out.astype(out_ref.dtype)


# ------------------------------ glue helpers ---------------------------------
def rope_tables(seq_len, dim, theta):
    """Half-width rotary tables (S, dim//2) in f32."""
    inv_freq = 1.0 / (theta ** (jnp.arange(0, dim, 2, dtype=jnp.float32) / dim))
    t = jnp.arange(seq_len, dtype=jnp.float32)
    freqs = jnp.outer(t, inv_freq)
    return jnp.cos(freqs), jnp.sin(freqs)


def _split_head_halves(w, n_heads, d):
    """Permute per-head columns [h*d:(h+1)*d] into [all first halves | all
    second halves] so in-kernel RoPE is lane-dense over the whole slab."""
    lead = w.shape[0]
    wr = w.reshape(lead, n_heads, d)
    first = wr[:, :, :d // 2].reshape(lead, n_heads * (d // 2))
    second = wr[:, :, d // 2:].reshape(lead, n_heads * (d // 2))
    return jnp.concatenate([first, second], axis=-1)


def rotate_half(x):
    h = x.shape[-1] // 2
    return jnp.concatenate([-x[..., h:], x[..., :h]], axis=-1)


# ------------------------------ module wrapper --------------------------------
def qwen2_attention(hidden_states, params):
    """Pallas implementation of Qwen2Attention.forward (no past_key_value)."""
    B, S, H = hidden_states.shape
    Wq, bq, Wk, bk, Wv, bv, Wo = params
    inv_scale = 1.0 / math.sqrt(HEAD_DIM)

    # fused projection weight (bf16 for the MXU, halves the weight HBM read)
    Wqkv = jnp.concatenate(
        [_split_head_halves(Wq, NUM_HEADS, HEAD_DIM),
         _split_head_halves(Wk, NUM_KV_HEADS, HEAD_DIM),
         Wv], axis=-1).astype(jnp.bfloat16)
    bqkv = jnp.concatenate(
        [_split_head_halves(bq, NUM_HEADS, HEAD_DIM),
         _split_head_halves(bk, NUM_KV_HEADS, HEAD_DIM),
         bv], axis=-1).astype(jnp.float32)
    Wo_bf = Wo.astype(jnp.bfloat16)

    cos_h, sin_h = rope_tables(S, HEAD_DIM, ROPE_THETA)       # (S, HALF) f32
    # pre-tiled to the concatenated-head width; 1/sqrt(D) folded into Q tables
    cos_q = jnp.tile(cos_h, (1, NUM_HEADS)) * inv_scale       # (S, QH)
    sin_q = jnp.tile(sin_h, (1, NUM_HEADS)) * inv_scale
    cos_k = jnp.tile(cos_h, (1, NUM_KV_HEADS))                # (S, KH)
    sin_k = jnp.tile(sin_h, (1, NUM_KV_HEADS))

    x2d = hidden_states.reshape(B * S, H)

    flops = B * (2 * S * H * QKV_W
                 + NUM_HEADS * (4 * S * S * HEAD_DIM)
                 + 2 * S * (NUM_HEADS * HEAD_DIM) * H)
    bytes_accessed = (x2d.size * 4 + Wqkv.size * 2 + bqkv.size * 4
                      + Wo_bf.size * 2
                      + (cos_q.size + sin_q.size + cos_k.size + sin_k.size) * 4
                      + B * S * H * 4 + B * S * KV_OUT_W * 4)
    cost = pl.CostEstimate(flops=flops,
                           transcendentals=B * NUM_HEADS * S * S,
                           bytes_accessed=bytes_accessed)

    out2d, kv2d = pl.pallas_call(
        fused_qwen2_attention_kernel,
        grid=(B,),
        in_specs=[
            pl.BlockSpec((S, H), lambda b: (b, 0)),             # x (per batch)
            pl.BlockSpec((H, QKV_W), lambda b: (0, 0)),          # Wqkv
            pl.BlockSpec((1, QKV_W), lambda b: (0, 0)),          # bqkv
            pl.BlockSpec((NUM_HEADS * HEAD_DIM, H), lambda b: (0, 0)),  # Wo
            pl.BlockSpec((S, QH), lambda b: (0, 0)),             # cos_q
            pl.BlockSpec((S, QH), lambda b: (0, 0)),             # sin_q
            pl.BlockSpec((S, KH), lambda b: (0, 0)),             # cos_k
            pl.BlockSpec((S, KH), lambda b: (0, 0)),             # sin_k
        ],
        out_specs=(
            pl.BlockSpec((S, H), lambda b: (b, 0)),
            pl.BlockSpec((S, KV_OUT_W), lambda b: (b, 0)),
        ),
        out_shape=(
            jax.ShapeDtypeStruct((B * S, H), hidden_states.dtype),
            jax.ShapeDtypeStruct((B * S, KV_OUT_W), hidden_states.dtype),
        ),
        compiler_params=pltpu.CompilerParams(
            dimension_semantics=("parallel",)),
        cost_estimate=cost,
    )(x2d, Wqkv, bqkv, Wo_bf, cos_q, sin_q, cos_k, sin_k)

    out = out2d.reshape(B, S, H)

    # new_key_value: pure layout plumbing — RoPE'd K came straight from the kernel
    kv = kv2d.reshape(B, S, KV_OUT_W)
    k1 = kv[:, :, :KH].reshape(B, S, NUM_KV_HEADS, HALF)
    k2 = kv[:, :, KH:2 * KH].reshape(B, S, NUM_KV_HEADS, HALF)
    k_rot = jnp.concatenate([k1, k2], axis=-1).transpose(0, 2, 1, 3)
    v_out = (kv[:, :, 2 * KH:].reshape(B, S, NUM_KV_HEADS, HEAD_DIM)
             .transpose(0, 2, 1, 3))
    return out, (k_rot, v_out)


# -------------------------- pure-JAX reference --------------------------------
def reference(hidden_states, params):
    B, S, H = hidden_states.shape
    Wq, bq, Wk, bk, Wv, bv, Wo = params
    q = hidden_states @ Wq + bq[0]
    k = hidden_states @ Wk + bk[0]
    v = hidden_states @ Wv + bv[0]
    q = q.reshape(B, S, NUM_HEADS, HEAD_DIM).transpose(0, 2, 1, 3)
    k = k.reshape(B, S, NUM_KV_HEADS, HEAD_DIM).transpose(0, 2, 1, 3)
    v = v.reshape(B, S, NUM_KV_HEADS, HEAD_DIM).transpose(0, 2, 1, 3)
    cos_h, sin_h = rope_tables(S, HEAD_DIM, ROPE_THETA)
    cos = jnp.concatenate([cos_h, cos_h], axis=-1)[None, None]
    sin = jnp.concatenate([sin_h, sin_h], axis=-1)[None, None]
    q = q * cos + rotate_half(q) * sin
    k = k * cos + rotate_half(k) * sin
    kf = jnp.repeat(k, KV_GROUPS, axis=1)
    vf = jnp.repeat(v, KV_GROUPS, axis=1)
    aw = jnp.einsum("bhqd,bhkd->bhqk", q, kf) / math.sqrt(HEAD_DIM)
    causal = jnp.tril(jnp.ones((S, S), dtype=bool))
    aw = aw + jnp.where(causal, 0.0, -1e9)[None, None]
    aw = jax.nn.softmax(aw.astype(jnp.float32), axis=-1)
    ao = jnp.einsum("bhqk,bhkd->bhqd", aw, vf)
    ao = ao.transpose(0, 2, 1, 3).reshape(B, S, H)
    return ao @ Wo, k, v


# ----------------------------------- main --------------------------------------
if __name__ == "__main__":
    key = jax.random.PRNGKey(0)
    keys = jax.random.split(key, 8)

    scale = 0.05
    Wq = scale * jax.random.normal(keys[0], (HIDDEN, NUM_HEADS * HEAD_DIM), DTYPE)
    bq = scale * jax.random.normal(keys[1], (1, NUM_HEADS * HEAD_DIM), DTYPE)
    Wk = scale * jax.random.normal(keys[2], (HIDDEN, NUM_KV_HEADS * HEAD_DIM), DTYPE)
    bk = scale * jax.random.normal(keys[3], (1, NUM_KV_HEADS * HEAD_DIM), DTYPE)
    Wv = scale * jax.random.normal(keys[4], (HIDDEN, NUM_KV_HEADS * HEAD_DIM), DTYPE)
    bv = scale * jax.random.normal(keys[5], (1, NUM_KV_HEADS * HEAD_DIM), DTYPE)
    Wo = scale * jax.random.normal(keys[6], (NUM_HEADS * HEAD_DIM, HIDDEN), DTYPE)
    params = (Wq, bq, Wk, bk, Wv, bv, Wo)

    x = jax.random.normal(keys[7], (BATCH, SEQ, HIDDEN), DTYPE)

    out, (new_k, new_v) = qwen2_attention(x, params)
    out = jax.block_until_ready(out)
    jax.block_until_ready(new_k)
    jax.block_until_ready(new_v)

    ref_out, ref_k, ref_v = reference(x, params)
    assert out.shape == (BATCH, SEQ, HIDDEN)
    assert new_k.shape == (BATCH, NUM_KV_HEADS, SEQ, HEAD_DIM)
    assert new_v.shape == (BATCH, NUM_KV_HEADS, SEQ, HEAD_DIM)

    # tolerance sized for bf16 MXU operands vs. the pure-f32 reference
    tol = dict(atol=2e-2, rtol=2e-2)
    assert jnp.allclose(out, ref_out, **tol), (
        f"out max abs err {jnp.max(jnp.abs(out - ref_out))}")
    assert jnp.allclose(new_k, ref_k, **tol), (
        f"k max abs err {jnp.max(jnp.abs(new_k - ref_k))}")
    assert jnp.allclose(new_v, ref_v, **tol), (
        f"v max abs err {jnp.max(jnp.abs(new_v - ref_v))}")
    print("KERNEL_OK")
</pallas_src>

<mosaic_0001>
module attributes {stable_mosaic.version = 11 : i64} {
  func.func @fused_qwen2_attention_kernel(%arg0: i32, %arg1: memref<8x32xf32, #tpu.memory_space<vmem>>, %arg2: memref<32x64xbf16, #tpu.memory_space<vmem>>, %arg3: memref<1x64xf32, #tpu.memory_space<vmem>>, %arg4: memref<32x32xbf16, #tpu.memory_space<vmem>>, %arg5: memref<8x16xf32, #tpu.memory_space<vmem>>, %arg6: memref<8x16xf32, #tpu.memory_space<vmem>>, %arg7: memref<8x8xf32, #tpu.memory_space<vmem>>, %arg8: memref<8x8xf32, #tpu.memory_space<vmem>>, %arg9: memref<8x32xf32, #tpu.memory_space<vmem>>, %arg10: memref<8x32xf32, #tpu.memory_space<vmem>>) attributes {dimension_semantics = [#tpu.dimension_semantics<parallel>], iteration_bounds = array<i64: 2>, scalar_prefetch = 0 : i64, scratch_operands = 0 : i64, tpu.core_type = #tpu.core_type<tc>, window_params = [{transform_indices = @transform_0, window_bounds = array<i64: 8, 32>}, {pipeline_mode = #tpu.pipeline_mode<synchronous>, transform_indices = @transform_1, window_bounds = array<i64: 32, 64>}, {pipeline_mode = #tpu.pipeline_mode<synchronous>, transform_indices = @transform_2, window_bounds = array<i64: 1, 64>}, {pipeline_mode = #tpu.pipeline_mode<synchronous>, transform_indices = @transform_3, window_bounds = array<i64: 32, 32>}, {pipeline_mode = #tpu.pipeline_mode<synchronous>, transform_indices = @transform_4, window_bounds = array<i64: 8, 16>}, {pipeline_mode = #tpu.pipeline_mode<synchronous>, transform_indices = @transform_5, window_bounds = array<i64: 8, 16>}, {pipeline_mode = #tpu.pipeline_mode<synchronous>, transform_indices = @transform_6, window_bounds = array<i64: 8, 8>}, {pipeline_mode = #tpu.pipeline_mode<synchronous>, transform_indices = @transform_7, window_bounds = array<i64: 8, 8>}, {transform_indices = @transform_8, window_bounds = array<i64: 8, 32>}, {transform_indices = @transform_9, window_bounds = array<i64: 8, 32>}]} {
    %c0 = arith.constant 0 : index
    %c0_0 = arith.constant 0 : index
    %0 = vector.load %arg1[%c0, %c0_0] : memref<8x32xf32, #tpu.memory_space<vmem>>, vector<8x32xf32>
    %1 = arith.truncf %0 : vector<8x32xf32> to vector<8x32xbf16>
    %c0_1 = arith.constant 0 : index
    %c0_2 = arith.constant 0 : index
    %2 = vector.load %arg2[%c0_1, %c0_2] : memref<32x64xbf16, #tpu.memory_space<vmem>>, vector<32x64xbf16>
    %cst = arith.constant dense<0.000000e+00> : vector<8x64xf32>
    %3 = tpu.matmul %1, %2, %cst {dimension_numbers = #tpu.dot_dimension_numbers<[1], [0], [0], [1], [0, 0, 1, 1], [], []>} : vector<8x32xbf16>, vector<32x64xbf16>, vector<8x64xf32> -> vector<8x64xf32>
    %c0_3 = arith.constant 0 : index
    %c0_4 = arith.constant 0 : index
    %4 = vector.load %arg3[%c0_3, %c0_4] : memref<1x64xf32, #tpu.memory_space<vmem>>, vector<1x64xf32>
    %5 = vector.broadcast %4 : vector<1x64xf32> to vector<8x64xf32>
    %6 = arith.addf %3, %5 : vector<8x64xf32>
    %7 = vector.extract_strided_slice %6 {offsets = [0, 0], sizes = [8, 16], strides = [1, 1]} : vector<8x64xf32> to vector<8x16xf32>
    %8 = vector.extract_strided_slice %6 {offsets = [0, 16], sizes = [8, 16], strides = [1, 1]} : vector<8x64xf32> to vector<8x16xf32>
    %9 = vector.extract_strided_slice %6 {offsets = [0, 32], sizes = [8, 8], strides = [1, 1]} : vector<8x64xf32> to vector<8x8xf32>
    %10 = vector.extract_strided_slice %6 {offsets = [0, 40], sizes = [8, 8], strides = [1, 1]} : vector<8x64xf32> to vector<8x8xf32>
    %11 = vector.extract_strided_slice %6 {offsets = [0, 48], sizes = [8, 16], strides = [1, 1]} : vector<8x64xf32> to vector<8x16xf32>
    %c0_5 = arith.constant 0 : index
    %c0_6 = arith.constant 0 : index
    %12 = vector.load %arg5[%c0_5, %c0_6] : memref<8x16xf32, #tpu.memory_space<vmem>>, vector<8x16xf32>
    %c0_7 = arith.constant 0 : index
    %c0_8 = arith.constant 0 : index
    %13 = vector.load %arg6[%c0_7, %c0_8] : memref<8x16xf32, #tpu.memory_space<vmem>>, vector<8x16xf32>
    %c0_9 = arith.constant 0 : index
    %c0_10 = arith.constant 0 : index
    %14 = vector.load %arg7[%c0_9, %c0_10] : memref<8x8xf32, #tpu.memory_space<vmem>>, vector<8x8xf32>
    %c0_11 = arith.constant 0 : index
    %c0_12 = arith.constant 0 : index
    %15 = vector.load %arg8[%c0_11, %c0_12] : memref<8x8xf32, #tpu.memory_space<vmem>>, vector<8x8xf32>
    %16 = arith.mulf %7, %12 : vector<8x16xf32>
    %17 = arith.mulf %8, %13 : vector<8x16xf32>
    %18 = arith.subf %16, %17 : vector<8x16xf32>
    %19 = arith.mulf %8, %12 : vector<8x16xf32>
    %20 = arith.mulf %7, %13 : vector<8x16xf32>
    %21 = arith.addf %19, %20 : vector<8x16xf32>
    %22 = arith.mulf %9, %14 : vector<8x8xf32>
    %23 = arith.mulf %10, %15 : vector<8x8xf32>
    %24 = arith.subf %22, %23 : vector<8x8xf32>
    %25 = arith.mulf %10, %14 : vector<8x8xf32>
    %26 = arith.mulf %9, %15 : vector<8x8xf32>
    %27 = arith.addf %25, %26 : vector<8x8xf32>
    %28 = tpu.concatenate %24, %27, %11 in 1 : vector<8x8xf32>, vector<8x8xf32>, vector<8x16xf32> -> vector<8x32xf32>
    %c0_13 = arith.constant 0 : index
    %c0_14 = arith.constant 0 : index
    %29 = vector.load %arg10[%c0_13, %c0_14] : memref<8x32xf32, #tpu.memory_space<vmem>>, vector<8x32xf32>
    tpu.vector_store %arg10[%c0_13, %c0_14], %28 {strides = array<i32>} : memref<8x32xf32, #tpu.memory_space<vmem>>, vector<8x32xf32>,
    %30 = arith.truncf %18 : vector<8x16xf32> to vector<8x16xbf16>
    %31 = arith.truncf %21 : vector<8x16xf32> to vector<8x16xbf16>
    %32 = arith.truncf %24 : vector<8x8xf32> to vector<8x8xbf16>
    %33 = arith.truncf %27 : vector<8x8xf32> to vector<8x8xbf16>
    %34 = arith.truncf %11 : vector<8x16xf32> to vector<8x16xbf16>
    %35 = tpu.iota {dimensions = array<i32: 0>} : vector<8x8xi32>
    %36 = tpu.iota {dimensions = array<i32: 1>} : vector<8x8xi32>
    %37 = arith.cmpi sle, %36, %35 : vector<8x8xi32>
    %cst_15 = arith.constant 0.000000e+00 : f32
    %cst_16 = arith.constant -1.000000e+09 : f32
    %38 = vector.broadcast %cst_15 : f32 to vector<8x8xf32>
    %39 = vector.broadcast %cst_16 : f32 to vector<8x8xf32>
    %40 = arith.select %37, %38, %39 : vector<8x8xi1>, vector<8x8xf32>
    %41 = vector.extract_strided_slice %32 {offsets = [0, 0], sizes = [8, 4], strides = [1, 1]} : vector<8x8xbf16> to vector<8x4xbf16>
    %42 = vector.extract_strided_slice %33 {offsets = [0, 0], sizes = [8, 4], strides = [1, 1]} : vector<8x8xbf16> to vector<8x4xbf16>
    %43 = vector.extract_strided_slice %34 {offsets = [0, 0], sizes = [8, 8], strides = [1, 1]} : vector<8x16xbf16> to vector<8x8xbf16>
    %44 = vector.extract_strided_slice %30 {offsets = [0, 0], sizes = [8, 4], strides = [1, 1]} : vector<8x16xbf16> to vector<8x4xbf16>
    %45 = vector.extract_strided_slice %31 {offsets = [0, 0], sizes = [8, 4], strides = [1, 1]} : vector<8x16xbf16> to vector<8x4xbf16>
    %cst_17 = arith.constant dense<0.000000e+00> : vector<8x8xf32>
    %46 = tpu.matmul %44, %41, %cst_17 {dimension_numbers = #tpu.dot_dimension_numbers<[1], [1], [0], [0], [0, 0, 1, 0], [], []>} : vector<8x4xbf16>, vector<8x4xbf16>, vector<8x8xf32> -> vector<8x8xf32>
    %cst_18 = arith.constant dense<0.000000e+00> : vector<8x8xf32>
    %47 = tpu.matmul %45, %42, %cst_18 {dimension_numbers = #tpu.dot_dimension_numbers<[1], [1], [0], [0], [0, 0, 1, 0], [], []>} : vector<8x4xbf16>, vector<8x4xbf16>, vector<8x8xf32> -> vector<8x8xf32>
    %48 = arith.addf %46, %47 : vector<8x8xf32>
    %49 = arith.addf %48, %40 : vector<8x8xf32>
    %cst_19 = arith.constant dense<0xFF800000> : vector<8xf32>
    %50 = vector.multi_reduction <maximumf>, %49, %cst_19 [1] : vector<8x8xf32> to vector<8xf32>
    %51 = vector.shape_cast %50 : vector<8xf32> to vector<8x1xf32>
    %52 = vector.broadcast %51 : vector<8x1xf32> to vector<8x8xf32>
    %53 = arith.subf %49, %52 : vector<8x8xf32>
    %54 = math.exp %53 : vector<8x8xf32>
    %cst_20 = arith.constant dense<0.000000e+00> : vector<8xf32>
    %55 = vector.multi_reduction <add>, %54, %cst_20 [1] : vector<8x8xf32> to vector<8xf32>
    %56 = vector.shape_cast %55 : vector<8xf32> to vector<8x1xf32>
    %57 = tpu.reciprocal %56 {approx = true} : vector<8x1xf32> -> vector<8x1xf32>
    %58 = vector.broadcast %57 : vector<8x1xf32> to vector<8x8xf32>
    %59 = arith.mulf %54, %58 : vector<8x8xf32>
    %60 = arith.truncf %59 : vector<8x8xf32> to vector<8x8xbf16>
    %cst_21 = arith.constant dense<0.000000e+00> : vector<8x8xf32>
    %61 = tpu.matmul %60, %43, %cst_21 {dimension_numbers = #tpu.dot_dimension_numbers<[1], [0], [0], [1], [0, 0, 1, 1], [], []>} : vector<8x8xbf16>, vector<8x8xbf16>, vector<8x8xf32> -> vector<8x8xf32>
    %62 = vector.extract_strided_slice %30 {offsets = [0, 4], sizes = [8, 4], strides = [1, 1]} : vector<8x16xbf16> to vector<8x4xbf16>
    %63 = vector.extract_strided_slice %31 {offsets = [0, 4], sizes = [8, 4], strides = [1, 1]} : vector<8x16xbf16> to vector<8x4xbf16>
    %cst_22 = arith.constant dense<0.000000e+00> : vector<8x8xf32>
    %64 = tpu.matmul %62, %41, %cst_22 {dimension_numbers = #tpu.dot_dimension_numbers<[1], [1], [0], [0], [0, 0, 1, 0], [], []>} : vector<8x4xbf16>, vector<8x4xbf16>, vector<8x8xf32> -> vector<8x8xf32>
    %cst_23 = arith.constant dense<0.000000e+00> : vector<8x8xf32>
    %65 = tpu.matmul %63, %42, %cst_23 {dimension_numbers = #tpu.dot_dimension_numbers<[1], [1], [0], [0], [0, 0, 1, 0], [], []>} : vector<8x4xbf16>, vector<8x4xbf16>, vector<8x8xf32> -> vector<8x8xf32>
    %66 = arith.addf %64, %65 : vector<8x8xf32>
    %67 = arith.addf %66, %40 : vector<8x8xf32>
    %cst_24 = arith.constant dense<0xFF800000> : vector<8xf32>
    %68 = vector.multi_reduction <maximumf>, %67, %cst_24 [1] : vector<8x8xf32> to vector<8xf32>
    %69 = vector.shape_cast %68 : vector<8xf32> to vector<8x1xf32>
    %70 = vector.broadcast %69 : vector<8x1xf32> to vector<8x8xf32>
    %71 = arith.subf %67, %70 : vector<8x8xf32>
    %72 = math.exp %71 : vector<8x8xf32>
    %cst_25 = arith.constant dense<0.000000e+00> : vector<8xf32>
    %73 = vector.multi_reduction <add>, %72, %cst_25 [1] : vector<8x8xf32> to vector<8xf32>
    %74 = vector.shape_cast %73 : vector<8xf32> to vector<8x1xf32>
    %75 = tpu.reciprocal %74 {approx = true} : vector<8x1xf32> -> vector<8x1xf32>
    %76 = vector.broadcast %75 : vector<8x1xf32> to vector<8x8xf32>
    %77 = arith.mulf %72, %76 : vector<8x8xf32>
    %78 = arith.truncf %77 : vector<8x8xf32> to vector<8x8xbf16>
    %cst_26 = arith.constant dense<0.000000e+00> : vector<8x8xf32>
    %79 = tpu.matmul %78, %43, %cst_26 {dimension_numbers = #tpu.dot_dimension_numbers<[1], [0], [0], [1], [0, 0, 1, 1], [], []>} : vector<8x8xbf16>, vector<8x8xbf16>, vector<8x8xf32> -> vector<8x8xf32>
    %80 = vector.extract_strided_slice %32 {offsets = [0, 4], sizes = [8, 4], strides = [1, 1]} : vector<8x8xbf16> to vector<8x4xbf16>
    %81 = vector.extract_strided_slice %33 {offsets = [0, 4], sizes = [8, 4], strides = [1, 1]} : vector<8x8xbf16> to vector<8x4xbf16>
    %82 = vector.extract_strided_slice %34 {offsets = [0, 8], sizes = [8, 8], strides = [1, 1]} : vector<8x16xbf16> to vector<8x8xbf16>
    %83 = vector.extract_strided_slice %30 {offsets = [0, 8], sizes = [8, 4], strides = [1, 1]} : vector<8x16xbf16> to vector<8x4xbf16>
    %84 = vector.extract_strided_slice %31 {offsets = [0, 8], sizes = [8, 4], strides = [1, 1]} : vector<8x16xbf16> to vector<8x4xbf16>
    %cst_27 = arith.constant dense<0.000000e+00> : vector<8x8xf32>
    %85 = tpu.matmul %83, %80, %cst_27 {dimension_numbers = #tpu.dot_dimension_numbers<[1], [1], [0], [0], [0, 0, 1, 0], [], []>} : vector<8x4xbf16>, vector<8x4xbf16>, vector<8x8xf32> -> vector<8x8xf32>
    %cst_28 = arith.constant dense<0.000000e+00> : vector<8x8xf32>
    %86 = tpu.matmul %84, %81, %cst_28 {dimension_numbers = #tpu.dot_dimension_numbers<[1], [1], [0], [0], [0, 0, 1, 0], [], []>} : vector<8x4xbf16>, vector<8x4xbf16>, vector<8x8xf32> -> vector<8x8xf32>
    %87 = arith.addf %85, %86 : vector<8x8xf32>
    %88 = arith.addf %87, %40 : vector<8x8xf32>
    %cst_29 = arith.constant dense<0xFF800000> : vector<8xf32>
    %89 = vector.multi_reduction <maximumf>, %88, %cst_29 [1] : vector<8x8xf32> to vector<8xf32>
    %90 = vector.shape_cast %89 : vector<8xf32> to vector<8x1xf32>
    %91 = vector.broadcast %90 : vector<8x1xf32> to vector<8x8xf32>
    %92 = arith.subf %88, %91 : vector<8x8xf32>
    %93 = math.exp %92 : vector<8x8xf32>
    %cst_30 = arith.constant dense<0.000000e+00> : vector<8xf32>
    %94 = vector.multi_reduction <add>, %93, %cst_30 [1] : vector<8x8xf32> to vector<8xf32>
    %95 = vector.shape_cast %94 : vector<8xf32> to vector<8x1xf32>
    %96 = tpu.reciprocal %95 {approx = true} : vector<8x1xf32> -> vector<8x1xf32>
    %97 = vector.broadcast %96 : vector<8x1xf32> to vector<8x8xf32>
    %98 = arith.mulf %93, %97 : vector<8x8xf32>
    %99 = arith.truncf %98 : vector<8x8xf32> to vector<8x8xbf16>
    %cst_31 = arith.constant dense<0.000000e+00> : vector<8x8xf32>
    %100 = tpu.matmul %99, %82, %cst_31 {dimension_numbers = #tpu.dot_dimension_numbers<[1], [0], [0], [1], [0, 0, 1, 1], [], []>} : vector<8x8xbf16>, vector<8x8xbf16>, vector<8x8xf32> -> vector<8x8xf32>
    %101 = vector.extract_strided_slice %30 {offsets = [0, 12], sizes = [8, 4], strides = [1, 1]} : vector<8x16xbf16> to vector<8x4xbf16>
    %102 = vector.extract_strided_slice %31 {offsets = [0, 12], sizes = [8, 4], strides = [1, 1]} : vector<8x16xbf16> to vector<8x4xbf16>
    %cst_32 = arith.constant dense<0.000000e+00> : vector<8x8xf32>
    %103 = tpu.matmul %101, %80, %cst_32 {dimension_numbers = #tpu.dot_dimension_numbers<[1], [1], [0], [0], [0, 0, 1, 0], [], []>} : vector<8x4xbf16>, vector<8x4xbf16>, vector<8x8xf32> -> vector<8x8xf32>
    %cst_33 = arith.constant dense<0.000000e+00> : vector<8x8xf32>
    %104 = tpu.matmul %102, %81, %cst_33 {dimension_numbers = #tpu.dot_dimension_numbers<[1], [1], [0], [0], [0, 0, 1, 0], [], []>} : vector<8x4xbf16>, vector<8x4xbf16>, vector<8x8xf32> -> vector<8x8xf32>
    %105 = arith.addf %103, %104 : vector<8x8xf32>
    %106 = arith.addf %105, %40 : vector<8x8xf32>
    %cst_34 = arith.constant dense<0xFF800000> : vector<8xf32>
    %107 = vector.multi_reduction <maximumf>, %106, %cst_34 [1] : vector<8x8xf32> to vector<8xf32>
    %108 = vector.shape_cast %107 : vector<8xf32> to vector<8x1xf32>
    %109 = vector.broadcast %108 : vector<8x1xf32> to vector<8x8xf32>
    %110 = arith.subf %106, %109 : vector<8x8xf32>
    %111 = math.exp %110 : vector<8x8xf32>
    %cst_35 = arith.constant dense<0.000000e+00> : vector<8xf32>
    %112 = vector.multi_reduction <add>, %111, %cst_35 [1] : vector<8x8xf32> to vector<8xf32>
    %113 = vector.shape_cast %112 : vector<8xf32> to vector<8x1xf32>
    %114 = tpu.reciprocal %113 {approx = true} : vector<8x1xf32> -> vector<8x1xf32>
    %115 = vector.broadcast %114 : vector<8x1xf32> to vector<8x8xf32>
    %116 = arith.mulf %111, %115 : vector<8x8xf32>
    %117 = arith.truncf %116 : vector<8x8xf32> to vector<8x8xbf16>
    %cst_36 = arith.constant dense<0.000000e+00> : vector<8x8xf32>
    %118 = tpu.matmul %117, %82, %cst_36 {dimension_numbers = #tpu.dot_dimension_numbers<[1], [0], [0], [1], [0, 0, 1, 1], [], []>} : vector<8x8xbf16>, vector<8x8xbf16>, vector<8x8xf32> -> vector<8x8xf32>
    %119 = tpu.concatenate %61, %79, %100, %118 in 1 : vector<8x8xf32>, vector<8x8xf32>, vector<8x8xf32>, vector<8x8xf32> -> vector<8x32xf32>
    %120 = arith.truncf %119 : vector<8x32xf32> to vector<8x32xbf16>
    %c0_37 = arith.constant 0 : index
    %c0_38 = arith.constant 0 : index
    %121 = vector.load %arg4[%c0_37, %c0_38] : memref<32x32xbf16, #tpu.memory_space<vmem>>, vector<32x32xbf16>
    %cst_39 = arith.constant dense<0.000000e+00> : vector<8x32xf32>
    %122 = tpu.matmul %120, %121, %cst_39 {dimension_numbers = #tpu.dot_dimension_numbers<[1], [0], [0], [1], [0, 0, 1, 1], [], []>} : vector<8x32xbf16>, vector<32x32xbf16>, vector<8x32xf32> -> vector<8x32xf32>
    %c0_40 = arith.constant 0 : index
    %c0_41 = arith.constant 0 : index
    %123 = vector.load %arg9[%c0_40, %c0_41] : memref<8x32xf32, #tpu.memory_space<vmem>>, vector<8x32xf32>
    tpu.vector_store %arg9[%c0_40, %c0_41], %122 {strides = array<i32>} : memref<8x32xf32, #tpu.memory_space<vmem>>, vector<8x32xf32>,
    return
  }
  func.func @transform_0(%arg0: i32) -> (i32, i32) {
    %c0_i32 = arith.constant 0 : i32
    %c0_i32_0 = arith.constant 0 : i32
    return %arg0, %c0_i32 : i32, i32
  }
  func.func @transform_1(%arg0: i32) -> (i32, i32) {
    %c0_i32 = arith.constant 0 : i32
    %c0_i32_0 = arith.constant 0 : i32
    %c0_i32_1 = arith.constant 0 : i32
    return %c0_i32, %c0_i32_0 : i32, i32
  }
  func.func @transform_2(%arg0: i32) -> (i32, i32) {
    %c0_i32 = arith.constant 0 : i32
    %c0_i32_0 = arith.constant 0 : i32
    %c0_i32_1 = arith.constant 0 : i32
    return %c0_i32, %c0_i32_0 : i32, i32
  }
  func.func @transform_3(%arg0: i32) -> (i32, i32) {
    %c0_i32 = arith.constant 0 : i32
    %c0_i32_0 = arith.constant 0 : i32
    %c0_i32_1 = arith.constant 0 : i32
    return %c0_i32, %c0_i32_0 : i32, i32
  }
  func.func @transform_4(%arg0: i32) -> (i32, i32) {
    %c0_i32 = arith.constant 0 : i32
    %c0_i32_0 = arith.constant 0 : i32
    %c0_i32_1 = arith.constant 0 : i32
    return %c0_i32, %c0_i32_0 : i32, i32
  }
  func.func @transform_5(%arg0: i32) -> (i32, i32) {
    %c0_i32 = arith.constant 0 : i32
    %c0_i32_0 = arith.constant 0 : i32
    %c0_i32_1 = arith.constant 0 : i32
    return %c0_i32, %c0_i32_0 : i32, i32
  }
  func.func @transform_6(%arg0: i32) -> (i32, i32) {
    %c0_i32 = arith.constant 0 : i32
    %c0_i32_0 = arith.constant 0 : i32
    %c0_i32_1 = arith.constant 0 : i32
    return %c0_i32, %c0_i32_0 : i32, i32
  }
  func.func @transform_7(%arg0: i32) -> (i32, i32) {
    %c0_i32 = arith.constant 0 : i32
    %c0_i32_0 = arith.constant 0 : i32
    %c0_i32_1 = arith.constant 0 : i32
    return %c0_i32, %c0_i32_0 : i32, i32
  }
  func.func @transform_8(%arg0: i32) -> (i32, i32) {
    %c0_i32 = arith.constant 0 : i32
    %c0_i32_0 = arith.constant 0 : i32
    return %arg0, %c0_i32 : i32, i32
  }
  func.func @transform_9(%arg0: i32) -> (i32, i32) {
    %c0_i32 = arith.constant 0 : i32
    %c0_i32_0 = arith.constant 0 : i32
    return %arg0, %c0_i32 : i32, i32
  }
}

</mosaic_0001>

<bundles_post_ra>
// kernel: tpu_custom_call.1
= control target key start
LH: loop header
LB: loop body
LE: loop exit
PB: predicated region body
PF: predicated region fallthrough
CT: control target
= control target key end

     0   :  { %s2445_s0 = inlined_call_operand.hbm [shape: f32[16,32], index: 0, kind: input, shape index: {}]   ;;  %s2446_s1 = inlined_call_operand.hbm [shape: bf16[32,64], index: 1, kind: input, shape index: {}]   ;;  %s2447_s2 = inlined_call_operand.vmem [shape: f32[1,64], index: 2, kind: input, shape index: {}]   ;;  %s2448_s3 = inlined_call_operand.hbm [shape: bf16[32,32], index: 3, kind: input, shape index: {}]   ;;  %s2449_s4 = inlined_call_operand.vmem [shape: f32[8,16], index: 4, kind: input, shape index: {}]   ;;  %s2450_s5 = inlined_call_operand.vmem [shape: f32[8,16], index: 5, kind: input, shape index: {}]   ;;  %s2451_s6 = inlined_call_operand.hbm [shape: f32[8,8], index: 6, kind: input, shape index: {}]   ;;  %s2452_s7 = inlined_call_operand.vmem [shape: f32[8,8], index: 7, kind: input, shape index: {}]   ;;  %s2453_s8 = inlined_call_operand.hbm [shape: f32[16,32], index: 8, kind: output, shape index: {0}]   ;;  %s2454_s9 = inlined_call_operand.hbm [shape: f32[16,32], index: 9, kind: output, shape index: {1}]  }
   0x1   :  { %2461 = sst [smem:[#allocation20_spill]] %s2453_s8 }
   0x2   :  { %15 = vsyncpa [#allocation3], 0 }
   0x3   :  { %17 = vsyncpa [#allocation3 + $0x1], 0 }
   0x4   :  { %18 = vsyncpa [#allocation6], 0 }
   0x5   :  { %19 = vsyncpa [#allocation9], 0 }
   0x6   :  { %20 = vsyncpa [#allocation4], 0 }
   0x7   :  { %22 = vsyncpa [#allocation4 + $0x1], 0 }
   0x8   :  { %23 = vsyncpa [#allocation12], 0 }
   0x9   :  { %25 = vsyncpa [#allocation12 + $0x1], 0  ;;  %s1996_s30 = smov 0   ;;  %s1998_s10 = smov 0  }
   0xa   :  { %s2000_s11 = smov 0   ;;  %s2002_s12 = smov 0  }
   0xb LB: > { %2462 = sst [smem:[#allocation18_spill]] %s1903_s30  ;;  %s2017_s13 = sadd.s32 4294967295, %s1915_s12   ;;  %s1915_s12 = sphi %s2002_s12, %s2486_s12   ;;  %s1911_s11 = sphi %s2000_s11, %s2485_s11   ;;  %s1907_s10 = sphi %s1998_s10, %s2484_s10   ;;  %s1903_s30 = sphi %s1996_s30, %s2483_s30  }
   0xc   : > { %s1412_s14 = sadd.s32 4294967294, %s1915_s12   ;;  %p51_p0 = scmp.ne.s32.totalorder %s1907_s10, %s1903_s30 }
   0xd   : > { %p2455_p1 = scmp.eq.s32.totalorder %s2017_s13, 0  ;;  %p228_p3 = scmp.eq.s32.totalorder %s1412_s14, 1 }
   0xe   : > { %p1413_p5 = scmp.ge.s32.totalorder %s1915_s12, 1  ;;  %p261_p7 = scmp.lt.s32.totalorder %s1915_s12, 3 }
   0xf   : > { %p2026_p4 = por %p2455_p1, %p51_p0  ;;  %p2031_p6 = por %p228_p3, %p51_p0 }
  0x10   : > { %p2036_p8 = pnand %p1413_p5, %p261_p7  ;;  %s1917_s18 = smov [#allocation5]  }
  0x11   : > { %s2463_s15 = scalar_select %p2026_p4, 1, 0 }
  0x12   : > { %s2464_s16 = scalar_select %p2031_p6, 1, 0 }
  0x13   : > { %s2466_s17 = scalar_select %p2036_p8, 1, 0 }
  0x14   : > { %2465 = sst [smem:[#allocation19_spill]] %s2464_s16  ;;  %s273_s19 = sshll.u32 %s1917_s18, 4  ;;  %s2040_s19 = int_to_ptr.vmem [resolvable:$true] %s273_s19 }
  0x15   : > { %p1588_p9 = pneg %p2036_p8  ;;  %s1918_s21 = smov [#allocation7]  }
  0x16   : > { %s289_s22 = sshll.u32 %s1918_s21, 4  ;;  %s1919_s23 = smov [#allocation8]   ;;  %s2051_s22 = int_to_ptr.vmem [resolvable:$true] %s289_s22 }
  0x17   : > { %p2047_p11 = pnand %p1588_p9, %p2455_p1  ;;  %s2053_s24 = sshll.u32 %s1919_s23, 4  ;;  %s310_s24 = int_to_ptr.vmem [resolvable:$true] %s2053_s24 }
  0x18   : > { %s1695_s27 = scalar_lea.hbm %s2446_s1, 256 }
  0x19   : > { %p1696_p12 = scmp.ne.s32.totalorder %s2446_s1, %s1695_s27  ;;  %p2063_p13 = pneg %p2047_p11 }
  0x1a   : > { %p1702_p5 = scmp.lt.u32.totalorder %s1695_s27, %s2446_s1 }
  0x1b   : > { %p1698_p0 = pnand %p2063_p13, %p1696_p12 }
  0x1d   : > { %p1699_p3 = pneg %p1698_p0 }
  0x1f   : > { %p1704_p7 = pnand %p1702_p5, %p1699_p3 }
  0x21   : > { %1707 = shalt.err (!%p1704_p7)
}
  0x22   : > { %s1708_s23 = scalar_lea.vmem %s2040_s19, 256  ;;  %p1716_p2 = scmp.lt.s32.totalorder %s2040_s19, %s2040_s19 }
  0x23   : > { %p1709_p9 = scmp.ne.s32.totalorder %s2040_s19, %s1708_s23  ;;  %p1717_p6 = scmp.lt.s32.totalorder %s1708_s23, %s1708_s23 }
  0x25   : > { %p1711_p10 = pnand %p1709_p9, %p2063_p13  ;;  %p1718_p12 = por %p1717_p6, %p1716_p2 }
  0x27   : > { %p1712_p1 = pneg %p1711_p10 }
  0x29   : > { %p1719_p0 = pnand %p1718_p12, %p1712_p1 }
  0x2b   : > { %1722 = shalt.err (!%p1719_p0)
}
  0x2c   : > { %s1920_s25 = smov 64   ;;  %s1921_s26 = smov 4  }
  0x2d   : > { %1591 = dma.hbm_to_vmem [thread:$0]  (!%p2047_p11), %s2446_s1, 256, %s2040_s19, [#allocation6], %s1920_s25, %s1920_s25, %s1921_s26  }
  0x2e   : > { %s1723_s21 = scalar_lea.hbm %s2448_s3, 256 }
  0x2f   : > { %p1724_p2 = scmp.ne.s32.totalorder %s2448_s3, %s1723_s21  ;;  %p1730_p10 = scmp.lt.u32.totalorder %s1723_s21, %s2448_s3 }
  0x31   : > { %p1726_p1 = pnand %p1724_p2, %p2063_p13 }
  0x33   : > { %p1727_p6 = pneg %p1726_p1 }
  0x35   : > { %p1732_p3 = pnand %p1730_p10, %p1727_p6 }
  0x37   : > { %1735 = shalt.err (!%p1732_p3)
}
  0x38   : > { %s1736_s19 = scalar_lea.vmem %s2051_s22, 256  ;;  %p1744_p12 = scmp.lt.s32.totalorder %s2051_s22, %s2051_s22 }
  0x39   : > { %p1737_p5 = scmp.ne.s32.totalorder %s2051_s22, %s1736_s19  ;;  %p1745_p0 = scmp.lt.s32.totalorder %s1736_s19, %s1736_s19 }
  0x3b   : > { %p1739_p7 = pnand %p1737_p5, %p2063_p13  ;;  %p1746_p2 = por %p1745_p0, %p1744_p12 }
  0x3d   : > { %p1740_p9 = pneg %p1739_p7 }
  0x3f   : > { %p1747_p1 = pnand %p1746_p2, %p1740_p9 }
  0x41   : > { %1750 = shalt.err (!%p1747_p1)
}
  0x42   : > { %1594 = dma.hbm_to_vmem [thread:$0]  (!%p2047_p11), %s2448_s3, 256, %s2051_s22, [#allocation6], %s1920_s25, %s1920_s25, %s1921_s26  }
  0x43   : > { %s1751_s28 = scalar_lea.hbm %s2451_s6, 128 }
  0x44   : > { %p1752_p6 = scmp.ne.s32.totalorder %s2451_s6, %s1751_s28  ;;  %p1758_p5 = scmp.lt.u32.totalorder %s1751_s28, %s2451_s6 }
  0x46   : > { %p1754_p10 = pnand %p1752_p6, %p2063_p13 }
  0x48   : > { %p1755_p3 = pneg %p1754_p10 }
  0x4a   : > { %p1760_p7 = pnand %p1758_p5, %p1755_p3 }
  0x4c   : > { %1763 = shalt.err (!%p1760_p7)
}
  0x4d   : > { %s1764_s19 = scalar_lea.vmem %s310_s24, 128  ;;  %p1772_p2 = scmp.lt.s32.totalorder %s310_s24, %s310_s24 }
  0x4e   : > { %p1765_p9 = scmp.ne.s32.totalorder %s310_s24, %s1764_s19  ;;  %p1773_p1 = scmp.lt.s32.totalorder %s1764_s19, %s1764_s19 }
  0x50   : > { %p1767_p12 = pnand %p1765_p9, %p2063_p13  ;;  %p1774_p4 = por %p1773_p1, %p1772_p2 }
  0x52   : > { %p1768_p0 = pneg %p1767_p12 }
  0x54   : > { %p1775_p8 = pnand %p1774_p4, %p1768_p0 }
  0x56   : > { %1778 = shalt.err (!%p1775_p8)
}
  0x57   : > { %1597 = dma.hbm_to_vmem [thread:$0]  (!%p2047_p11), %s2451_s6, 128, %s310_s24, [#allocation9]  }
  0x58   : > { %s2127_s14 = sadd.s32 1, %s1915_s12   ;;  %s38_s20 = sadd.s32 1, %s1911_s11 }
  0x59   : > { %s35_s26 = ssub.s32 %s1915_s12, %s2127_s14  ;;  %p45_p8 = scmp.ne.s32.totalorder %s1911_s11, %s1907_s10 }
  0x5a   : > { %p36_p4 = scmp.eq.s32.totalorder %s35_s26, 0  ;;  %p46_p13 = scmp.eq.s32.totalorder %s1915_s12, 0 }
  0x5b   : > { %p1612_p6 = scmp.lt.s32.totalorder %s1915_s12, 2  ;;  %p2469_p3 = scmp.eq.s32.totalorder %s2017_s13, 1 }
  0x5c   : > { %s2137_s8 = scalar_select %p36_p4, %s1911_s11, %s38_s20  }
  0x5d   : > { %p47_p10 = por %p46_p13, %p45_p8  ;;  %p2141_p5 = por %p2469_p3, %p45_p8 }
  0x5e   : > { %s323_s16 = sand.u32 1, %s1911_s11   ;;  %s1419_s27 = sshll.u32 %s1915_s12, 7 }
  0x5f   : > { %s1418_s24 = sshll.u32 %s323_s16, 3  ;;  %s2150_s18 = scalar_lea.hbm %s2445_s0, %s1419_s27 }
  0x60   : > { %s327_s21 = scalar_lea.vmem [#allocation2], %s1418_s24  ;;  %p2152_p11 = pnand %p1612_p6, %p47_p10 }
  0x61   : > { %s334_s23 = sshll.u32 %s327_s21, 4  ;;  %s324_s22 = scalar_lea.sflag [#allocation3], %s323_s16  ;;  %s2156_s23 = int_to_ptr.vmem [resolvable:$true] %s334_s23 }
  0x62   : > { %s1779_s25 = scalar_lea.hbm %s2150_s18, 128  ;;  %p1781_p9 = pneg %p2152_p11 }
  0x63   : > { %p1780_p7 = scmp.ne.s32.totalorder %s2150_s18, %s1779_s25  ;;  %s1784_s27 = scalar_lea.hbm %s2445_s0, 256 }
  0x64   : > { %p1785_p2 = scmp.lt.u32.totalorder %s2150_s18, %s2445_s0  ;;  %p1786_p1 = scmp.lt.u32.totalorder %s1784_s27, %s1779_s25 }
  0x65   : > { %p1782_p12 = pnand %p1781_p9, %p1780_p7  ;;  %p1788_p8 = scmp.lt.u32.totalorder %s1779_s25, %s2150_s18 }
  0x66   : > { %p1787_p4 = por %p1786_p1, %p1785_p2 }
  0x67   : > { %p1783_p0 = pneg %p1782_p12 }
  0x68   : > { %p1789_p13 = por %p1788_p8, %p1787_p4 }
  0x6a   : > { %p1790_p6 = pnand %p1789_p13, %p1783_p0 }
  0x6c   : > { %1793 = shalt.err (!%p1790_p6)
}
  0x6d   : > { %s1794_s16 = scalar_lea.vmem %s2156_s23, 128  ;;  %s1922_s29 = smov [#allocation2]  }
  0x6e   : > { %p1795_p10 = scmp.ne.s32.totalorder %s2156_s23, %s1794_s16  ;;  %s1799_s21 = sshll.u32 %s1922_s29, 4  ;;  %s1800_s21 = int_to_ptr.vmem [resolvable:$false] %s1799_s21 }
  0x6f   : > { %s1801_s26 = scalar_lea.vmem %s1800_s21, 256  ;;  %p1802_p12 = scmp.lt.s32.totalorder %s2156_s23, %s1800_s21 }
  0x70   : > { %p1797_p3 = pnand %p1795_p10, %p1781_p9  ;;  %p1803_p2 = scmp.lt.s32.totalorder %s1801_s26, %s1794_s16 }
  0x72   : > { %p1798_p7 = pneg %p1797_p3  ;;  %p1804_p1 = por %p1803_p2, %p1802_p12 }
  0x74   : > { %p1805_p4 = pnand %p1804_p1, %p1798_p7 }
  0x76   : > { %1808 = shalt.err (!%p1805_p4)
}
  0x77   : > { %1601 = dma.hbm_to_vmem [thread:$0]  (!%p2152_p11), %s2150_s18, 128, %s2156_s23, %s324_s22  }
  0x78   : > { %p2472_p0 = scmp.ne.s32.totalorder %s2466_s17, 0 }
  0x79   : > { %s2186_s25 = sand.u32 (!%p2472_p0), 1, %s1907_s10   ;;  %p2473_p9 = scmp.ne.s32.totalorder (!%p2472_p0), %s2463_s15, 0 }
  0x7a   : > { %343 = sbr.rel (%p2472_p0) target bundleno = 3314 (0xcf2), region = 52  ;;  %s2189_s20 = sshll.u32 (!%p2472_p0), %s2186_s25, 3 }
  0x7b   : > { %s346_s27 = scalar_lea.sflag (!%p2472_p0), [#allocation3], %s2186_s25  ;;  %s349_s24 = scalar_lea.vmem (!%p2472_p0), [#allocation2], %s2189_s20 }
  0x81   : > { %1882 = dma.done.wait (%p2473_p9), %s346_s27, 128  }
  0x82   : > { %1884 = vsyncadd (%p2473_p9), %s346_s27, 4294967168  ;;  %p2474_p11 = scmp.eq.s32.totalorder %s2017_s13, 0 }
  0x84   : > { %1886 = dma.done.wait (%p2474_p11), [#allocation6], 512   ;;  %p2475_p8 = pmov %p2474_p11 }
  0x86   : > { %1888 = vsyncadd (%p2475_p8), [#allocation6], 4294966784  ;;  %p2476_p13 = pmov %p2475_p8 }
  0x87   : > { %p2477_p6 = pmov %p2475_p8 }
  0x88   : > { %1890 = dma.done.wait (%p2476_p13), [#allocation9], 128  }
  0x89   : > { %1892 = vsyncadd (%p2477_p6), [#allocation9], 4294967168  ;;  %v1923_v0 = vmov 0.0   ;;  %vm1924_vm0 = vmmov 0   ;;  %v1675_v1 = vld [vmem:[#allocation5] sm:$0xff]   ;;  %v1676_v2 = vld [vmem:[#allocation5 + $0x8] sm:$0xff]   ;;  %v547_v46 = vlaneseq }
  0x8a   : > { %1482 = vmatprep.subr.bf16.mxu0 %v1923_v0  ;;  %1486 = vmatprep.mubr.msk.bf16.mxu0 %vm1924_vm0, %v1923_v0  ;;  %v402_v3 = vld [vmem:[%s349_s24] sm:$0xff]  ;;  %v473_v5 = vld [vmem:[#allocation8] sm:$0xff]  ;;  %s1925_s18 = smov 40   ;;  %s1926_s23 = smov 32   ;;  %vm427_vm1 = vcmask 261120   ;;  %vm559_vm2 = vcmask 31744  }
  0x8b   : > { %1490 = vmatprep.subr.bf16.mxu1 %v1923_v0  ;;  %1492 = vmatprep.mubr.msk.bf16.mxu1 %vm1924_vm0, %v1923_v0  ;;  %v474_v4 = vld [vmem:[%s2452_s7] sm:$0xff]  ;;  %v403_v6 = vpack.c.bf16 %v402_v3, %v402_v3  ;;  %s1927_s28 = smov 8   ;;  %s1928_s16 = smov 120   ;;  %v548_v47 = vshrl.u32 %v547_v46, 7  ;;  %v550_v48 = vand.u32 127, %v547_v46  ;;  %vm537_vm4 = vcmask 64512  }
  0x8c   : > { %1483 = vmatpush3.bf16.msra.mxu0 %v1675_v1  ;;  %503 = vrot.lane.b32.xlu0 %v474_v4, %s1925_s18  ;;  %v1427_v8 = vld [vmem:[%s2447_s2] ss:$0 sm:$0xff]  ;;  %s1929_s24 = smov 16   ;;  %s1930_s15 = smov 88   ;;  %v1933_v51 = vmov -1e+09  }
  0x8d   : > { %1484 = vmatprep.subr.bf16.mxu0 %v1923_v0  ;;  %498 = vrot.lane.b32.xlu1 %v473_v5, %s1926_s23  ;;  %v471_v17 = vld [vmem:[%s2449_s4] sm:$0xff]  ;;  %s1931_s17 = smov 96   ;;  %vm551_vm3 = vcmp.le.s32.totalorder %v550_v48, %v548_v47  ;;  %s1935_s19 = smov 124   ;;  %vm674_vm5 = vcmask 1043456   ;;  %vm539_vm6 = vcmask 130048   ;;  %vm1186_vm7 = vcmask 195584  }
  0x8e   : > { %v472_v18 = vld [vmem:[%s2450_s5] sm:$0xff]  ;;  %v2278_v52 = vsel %vm551_vm3, 0.0, %v1933_v51  ;;  %s1936_s22 = smov 80   ;;  %s1937_s29 = smov 84  }
  0x8f   : > { %s1938_s21 = smov 104   ;;  %s1939_s26 = smov 92  }
  0x90   : > { %1485 = vmatpush3.bf16.msra.mxu0 %v1676_v2  ;;  %516 = vrot.lane.b32.xlu0 %v474_v4, %s1926_s23  ;;  %s1934_s23 = smov 108   ;;  %s1941_s27 = smov 116  }
  0x91   : > { %1496 = vmatprep.subr.bf16.mxu0 %v1923_v0  ;;  %512 = vrot.lane.b32.xlu1 %v473_v5, %s1925_s18  ;;  %s1932_s18 = smov 112  }
  0x93   : > { %1487 = vmatmul.mubr.msk.bf16.vlgmr.msra.gmra.mrb[0].mxu0 %vm427_vm1, %v403_v6 }
  0x94   : > { %1498 = vmatprep.mubr.msk.bf16.mxu0 %vm1924_vm0, %v1923_v0 }
  0xfe   : > { %v504_v7 = vpop.permute.xlu0 %503 }
  0xff   : > { %v499_v20 = vpop.permute.xlu1 %498 }
 0x102   : > { %v517_v10 = vpop.permute.xlu0 %516 }
 0x103   : > { %v513_v21 = vpop.permute.xlu1 %512 }
 0x166   : > { %v465_v9 = vpop.f32.mrb[0].mxu0 }
 0x167   : > { %v2222_v11 = vadd.f32 %v1427_v8, %v465_v9  ;;  %v1488_v12 = vpop.f32.mrb[1].mxu0 }
 0x168   : > { %v468_v13 = vpop.f32.mrb[2].mxu0 }
 0x169   : > { %v519_v14 = vmul.f32 %v517_v10, %v2222_v11  ;;  %v1489_v15 = vpop.f32.mrb[3].mxu0  ;;  %v506_v16 = vmul.f32 %v504_v7, %v2222_v11  ;;  %v491_v19 = vmul.f32 %v472_v18, %v2222_v11  ;;  %v515_v22 = vmul.f32 %v513_v21, %v2222_v11 }
 0x16a   : > { %v501_v23 = vmul.f32 %v499_v20, %v2222_v11  ;;  %v475_v41 = vmul.f32 %v471_v17, %v2222_v11  ;;  %v2290_v5 = vpack.c.bf16 %v2222_v11, %v2222_v11 }
 0x16b   : > { %521 = vrot.lane.b32.xlu1 %v519_v14, %s1927_s28  ;;  %508 = vrot.lane.b32.xlu0 %v506_v16, %s1928_s16 }
 0x16f   : > { %487 = vrot.lane.b32.xlu1 %v471_v17, %s1929_s24  ;;  %477 = vrot.lane.b32.xlu0 %v472_v18, %s1929_s24 }
 0x173   : > { %493 = vrot.lane.b32.xlu0 %v491_v19, %s1929_s24 }
 0x1dd   : > { %v522_v24 = vpop.permute.xlu1 %521  ;;  %v509_v25 = vpop.permute.xlu0 %508 }
 0x1de   : > { %v2240_v26 = vadd.f32 %v522_v24, %v515_v22  ;;  %v2242_v27 = vsub.f32 %v501_v23, %v509_v25 }
 0x1e0   : > { %v2246_v28 = vpack.c.bf16 %v2240_v26, %v2240_v26  ;;  %v2250_v29 = vpack.c.bf16 %v2242_v27, %v2242_v27 }
 0x1e1   : > { %v488_v30 = vpop.permute.xlu1 %487  ;;  %v478_v31 = vpop.permute.xlu0 %477 }
 0x1e2   : > { %557 = vrot.lane.b32.xlu1 %v2246_v28, %s1930_s15  ;;  %607 = vrot.lane.b32.xlu0 %v2250_v29, %s1931_s17  ;;  %v490_v32 = vmul.f32 %v488_v30, %v2222_v11  ;;  %v480_v33 = vmul.f32 %v478_v31, %v2222_v11  ;;  %s1942_s15 = smov 100  }
 0x1e5   : > { %v494_v34 = vpop.permute.xlu0 %493 }
 0x1e6   : > { %v496_v35 = vadd.f32 %v494_v34, %v490_v32  ;;  %482 = vrot.lane.b32.xlu1 %v480_v33, %s1932_s18 }
 0x1e8   : > { %v2257_v36 = vpack.c.bf16 %v496_v35, %v496_v35 }
 0x1ea   : > { %554 = vrot.lane.b32.xlu0 %v2257_v36, %s1932_s18 }
 0x254   : > { %v558_v37 = vpop.permute.xlu1 %557  ;;  %v608_v38 = vpop.permute.xlu0 %607 }
 0x255   : > { %v2261_v39 = vsel %vm559_vm2, %v608_v38, 0  ;;  %v564_v40 = vsel %vm559_vm2, %v558_v37, 0 }
 0x256   : > { %1491 = vmatpush3.bf16.xpose.msra.mxu1 %v564_v40  ;;  %1497 = vmatpush3.bf16.xpose.msra.mxu0 %v2261_v39 }
 0x257   : > { %1508 = vmatprep.subr.bf16.mxu0 %v1923_v0  ;;  %1502 = vmatprep.subr.bf16.mxu1 %v1923_v0 }
 0x258   : > { %v483_v42 = vpop.permute.xlu1 %482 }
 0x259   : > { %v485_v43 = vsub.f32 %v475_v41, %v483_v42 }
 0x25b   : > { %v2268_v44 = vpack.c.bf16 %v485_v43, %v485_v43 }
 0x25c   : > { %v555_v45 = vpop.permute.xlu0 %554 }
 0x25d   : > { %1493 = vmatmul.mubr.msk.bf16.vlgmr.msra.gmra.mrb[0].mxu1 %vm559_vm2, %v555_v45  ;;  %1499 = vmatmul.mubr.msk.bf16.vlgmr.msra.gmra.mrb[4].mxu0 %vm559_vm2, %v2268_v44 }
 0x25e   : > { %1509 = vmatpush3.bf16.xpose.msra.mxu0 %v564_v40  ;;  %1510 = vmatprep.mubr.msk.bf16.mxu0 %vm1924_vm0, %v1923_v0 }
 0x25f   : > { %1520 = vmatprep.subr.bf16.mxu0 %v1923_v0  ;;  %1504 = vmatprep.mubr.msk.bf16.mxu1 %vm1924_vm0, %v1923_v0 }
 0x330   : > { %v600_v49 = vpop.f32.mrb[0].mxu1  ;;  %v649_v50 = vpop.f32.mrb[4].mxu0 }
 0x331   : > { %v650_v53 = vadd.f32 %v649_v50, %v600_v49  ;;  %v1494_v54 = vpop.f32.mrb[1].mxu1  ;;  %v1500_v55 = vpop.f32.mrb[5].mxu0 }
 0x332   : > { %v603_v56 = vpop.f32.mrb[2].mxu1  ;;  %v652_v57 = vpop.f32.mrb[6].mxu0 }
 0x333   : > { %v1495_v58 = vpop.f32.mrb[3].mxu1  ;;  %v1501_v59 = vpop.f32.mrb[7].mxu0  ;;  %v655_v60 = vadd.f32 %v650_v53, %v2278_v52 }
 0x335   : > { %v656_v61 = vsel %vm537_vm4, %v655_v60, -inf }
 0x336   : > { %657 = vmax.xlane.f32.xlu1 %v656_v61 }
 0x347   : > { %718 = vrot.lane.b32.xlu1 %v2257_v36, %s1934_s23 }
 0x34b   : > { %764 = vrot.lane.b32.xlu1 %v2268_v44, %s1935_s19 }
 0x3c3   : > { %v658_v62 = vpop.xlane.xlu1 %657 }
 0x3c4   : > { %v659_v63 = vsub.f32 %v655_v60, %v658_v62 }
 0x3c6   : > { %v660_v1 = vmul.f32 1.442695, %v659_v63 }
 0x3c7   : > { %v719_v2 = vpop.permute.xlu1 %718 }
 0x3c8   : > { %1679 = vpow2.f32 %v660_v1  ;;  %1511 = vmatmul.mubr.msk.bf16.vlgmr.msra.gmra.mrb[8].mxu0 %vm559_vm2, %v719_v2 }
 0x3c9   : > { %1522 = vmatprep.mubr.msk.bf16.mxu0 %vm1924_vm0, %v1923_v0 }
 0x3cb   : > { %v765_v13 = vpop.permute.xlu1 %764 }
 0x3d2   : > { %v1680_v3 = vpop.eup %1679 }
 0x3d3   : > { %v662_v4 = vsel %vm537_vm4, %v1680_v3, 0.0 }
 0x3d4   : > { %663 = vadd.xlane.f32.xlu0 %v662_v4 }
 0x3ea   : > { %669 = vrot.lane.b32.xlu0 %v2290_v5, %s1936_s22 }
 0x461   : > { %v664_v6 = vpop.xlane.xlu0 %663 }
 0x462   : > { %1681 = vrcp.f32 %v664_v6 }
 0x465   : > { %v670_v7 = vpop.permute.xlu0 %669 }
 0x466   : > { %v676_v8 = vsel %vm674_vm5, %v670_v7, 0 }
 0x467   : > { %1503 = vmatpush3.bf16.msra.mxu1 %v676_v8  ;;  %1521 = vmatpush3.bf16.msra.mxu0 %v676_v8 }
 0x468   : > { %1514 = vmatprep.subr.bf16.mxu1 %v1923_v0  ;;  %1532 = vmatprep.subr.bf16.mxu0 %v1923_v0 }
 0x46c   : > { %v1682_v9 = vpop.eup %1681 }
 0x46d   : > { %v666_v10 = vmul.f32 %v1682_v9, %v1680_v3 }
 0x46f   : > { %v667_v12 = vpack.c.bf16 %v666_v10, %v666_v10 }
 0x471   : > { %1505 = vmatmul.mubr.msk.bf16.vlgmr.msra.gmra.mrb[4].mxu1 %vm537_vm4, %v667_v12 }
 0x472   : > { %1515 = vmatpush3.bf16.xpose.msra.mxu1 %v2261_v39  ;;  %1516 = vmatprep.mubr.msk.bf16.mxu1 %vm1924_vm0, %v1923_v0 }
 0x473   : > { %1526 = vmatprep.subr.bf16.mxu1 %v1923_v0 }
 0x479   : > { %1517 = vmatmul.mubr.msk.bf16.vlgmr.msra.gmra.mrb[8].mxu1 %vm559_vm2, %v765_v13 }
 0x47a   : > { %1528 = vmatprep.mubr.msk.bf16.mxu1 %vm1924_vm0, %v1923_v0 }
 0x49b   : > { %v757_v14 = vpop.f32.mrb[8].mxu0 }
 0x49c   : > { %v1512_v15 = vpop.f32.mrb[9].mxu0 }
 0x49d   : > { %v760_v16 = vpop.f32.mrb[10].mxu0 }
 0x49e   : > { %v1513_v17 = vpop.f32.mrb[11].mxu0 }
 0x544   : > { %v2304_v18 = vpop.f32.mrb[4].mxu1 }
 0x545   : > { %v1506_v19 = vpop.f32.mrb[5].mxu1 }
 0x546   : > { %v715_v20 = vpop.f32.mrb[6].mxu1 }
 0x547   : > { %v1507_v21 = vpop.f32.mrb[7].mxu1 }
 0x54c   : > { %v803_v22 = vpop.f32.mrb[8].mxu1 }
 0x54d   : > { %v804_v23 = vadd.f32 %v803_v22, %v757_v14  ;;  %v1518_v24 = vpop.f32.mrb[9].mxu1 }
 0x54e   : > { %v806_v25 = vpop.f32.mrb[10].mxu1 }
 0x54f   : > { %v1519_v30 = vpop.f32.mrb[11].mxu1  ;;  %v809_v31 = vadd.f32 %v804_v23, %v2278_v52 }
 0x551   : > { %v810_v32 = vsel %vm537_vm4, %v809_v31, -inf }
 0x552   : > { %811 = vmax.xlane.f32.xlu0 %v810_v32 }
 0x568   : > { %867 = vrot.lane.b32.xlu0 %v2246_v28, %s1937_s29  ;;  %s1255_s29 = scalar_lea.sflag [#allocation12], %s2186_s25 }
 0x56c   : > { %865 = vrot.lane.b32.xlu0 %v2257_v36, %s1938_s21 }
 0x5df   : > { %v812_v33 = vpop.xlane.xlu0 %811 }
 0x5e0   : > { %v813_v34 = vsub.f32 %v809_v31, %v812_v33 }
 0x5e2   : > { %v814_v35 = vmul.f32 1.442695, %v813_v34 }
 0x5e3   : > { %v868_v37 = vpop.permute.xlu0 %867 }
 0x5e4   : > { %1683 = vpow2.f32 %v814_v35  ;;  %v873_v38 = vsel %vm559_vm2, %v868_v37, 0 }
 0x5e5   : > { %1527 = vmatpush3.bf16.xpose.msra.mxu1 %v873_v38 }
 0x5e6   : > { %1538 = vmatprep.subr.bf16.mxu1 %v1923_v0 }
 0x5e7   : > { %v866_v39 = vpop.permute.xlu0 %865 }
 0x5ec   : > { %1529 = vmatmul.mubr.msk.bf16.vlgmr.msra.gmra.mrb[12].mxu1 %vm559_vm2, %v866_v39 }
 0x5ed   : > { %1540 = vmatprep.mubr.msk.bf16.mxu1 %vm1924_vm0, %v1923_v0 }
 0x5ee   : > { %v1684_v28 = vpop.eup %1683 }
 0x5ef   : > { %v816_v40 = vsel %vm537_vm4, %v1684_v28, 0.0 }
 0x5f0   : > { %817 = vadd.xlane.f32.xlu1 %v816_v40 }
 0x601   : > { %917 = vrot.lane.b32.xlu1 %v2250_v29, %s1939_s26  ;;  %s1944_s26 = smov [#allocation11]  }
 0x605   : > { %915 = vrot.lane.b32.xlu1 %v2268_v44, %s1928_s16  ;;  %s1940_s16 = smov 72  }
 0x67d   : > { %v818_v41 = vpop.xlane.xlu1 %817 }
 0x67e   : > { %1685 = vrcp.f32 %v818_v41  ;;  %v1677_v41 = vld [vmem:[#allocation7] sm:$0xff]  }
 0x681   : > { %v918_v45 = vpop.permute.xlu1 %917 }
 0x682   : > { %v923_v47 = vsel %vm559_vm2, %v918_v45, 0 }
 0x685   : > { %v916_v29 = vpop.permute.xlu1 %915 }
 0x688   : > { %v1686_v42 = vpop.eup %1685 }
 0x689   : > { %v820_v43 = vmul.f32 %v1686_v42, %v1684_v28  ;;  %v1678_v42 = vld [vmem:[#allocation7 + $0x8] sm:$0xff]  }
 0x68b   : > { %v821_v46 = vpack.c.bf16 %v820_v43, %v820_v43 }
 0x68d   : > { %1523 = vmatmul.mubr.msk.bf16.vlgmr.msra.gmra.mrb[12].mxu0 %vm537_vm4, %v821_v46 }
 0x68e   : > { %1533 = vmatpush3.bf16.xpose.msra.mxu0 %v923_v47  ;;  %1534 = vmatprep.mubr.msk.bf16.mxu0 %vm1924_vm0, %v1923_v0 }
 0x68f   : > { %1544 = vmatprep.subr.bf16.mxu0 %v1923_v0 }
 0x695   : > { %1535 = vmatmul.mubr.msk.bf16.vlgmr.msra.gmra.mrb[16].mxu0 %vm559_vm2, %v916_v29 }
 0x696   : > { %1545 = vmatpush3.bf16.xpose.msra.mxu0 %v873_v38  ;;  %1546 = vmatprep.mubr.msk.bf16.mxu0 %vm1924_vm0, %v1923_v0 }
 0x697   : > { %1556 = vmatprep.subr.bf16.mxu0 %v1923_v0 }
 0x6bf   : > { %v909_v48 = vpop.f32.mrb[12].mxu1 }
 0x6c0   : > { %v1530_v49 = vpop.f32.mrb[13].mxu1 }
 0x6c1   : > { %v912_v50 = vpop.f32.mrb[14].mxu1 }
 0x6c2   : > { %v1531_v51 = vpop.f32.mrb[15].mxu1 }
 0x760   : > { %v2328_v53 = vpop.f32.mrb[12].mxu0 }
 0x761   : > { %v1524_v54 = vpop.f32.mrb[13].mxu0 }
 0x762   : > { %v862_v55 = vpop.f32.mrb[14].mxu0 }
 0x763   : > { %v1525_v56 = vpop.f32.mrb[15].mxu0 }
 0x768   : > { %v959_v57 = vpop.f32.mrb[16].mxu0 }
 0x769   : > { %v960_v58 = vadd.f32 %v959_v57, %v909_v48  ;;  %v1536_v59 = vpop.f32.mrb[17].mxu0 }
 0x76a   : > { %v962_v60 = vpop.f32.mrb[18].mxu0 }
 0x76b   : > { %v1537_v61 = vpop.f32.mrb[19].mxu0  ;;  %v965_v62 = vadd.f32 %v960_v58, %v2278_v52 }
 0x76d   : > { %v966_v63 = vsel %vm537_vm4, %v965_v62, -inf }
 0x76e   : > { %967 = vmax.xlane.f32.xlu0 %v966_v63 }
 0x784   : > { %978 = vrot.lane.b32.xlu0 %v2290_v5, %s1940_s16  ;;  %s1813_s16 = sshll.u32 %s1944_s26, 4  ;;  %s1814_s16 = int_to_ptr.vmem [resolvable:$false] %s1813_s16 }
 0x788   : > { %1071 = vrot.lane.b32.xlu0 %v2268_v44, %s1941_s27  ;;  %s1815_s27 = scalar_lea.vmem %s1814_s16, 256 }
 0x7fb   : > { %v968_v1 = vpop.xlane.xlu0 %967 }
 0x7fc   : > { %v969_v2 = vsub.f32 %v965_v62, %v968_v1 }
 0x7fe   : > { %v970_v3 = vmul.f32 1.442695, %v969_v2 }
 0x7ff   : > { %v979_v4 = vpop.permute.xlu0 %978 }
 0x800   : > { %1687 = vpow2.f32 %v970_v3  ;;  %v984_v6 = vsel %vm674_vm5, %v979_v4, 0 }
 0x801   : > { %1539 = vmatpush3.bf16.msra.mxu1 %v984_v6 }
 0x802   : > { %1550 = vmatprep.subr.bf16.mxu1 %v1923_v0 }
 0x80a   : > { %v1688_v7 = vpop.eup %1687 }
 0x80b   : > { %v972_v8 = vsel %vm537_vm4, %v1688_v7, 0.0 }
 0x80c   : > { %973 = vadd.xlane.f32.xlu1 %v972_v8 }
 0x81d   : > { %1026 = vrot.lane.b32.xlu1 %v2257_v36, %s1942_s15  ;;  %v1072_v36 = vpop.permute.xlu0 %1071 }
 0x899   : > { %v974_v5 = vpop.xlane.xlu1 %973 }
 0x89a   : > { %1689 = vrcp.f32 %v974_v5 }
 0x89d   : > { %v1027_v44 = vpop.permute.xlu1 %1026 }
 0x89e   : > { %1547 = vmatmul.mubr.msk.bf16.vlgmr.msra.gmra.mrb[20].mxu0 %vm559_vm2, %v1027_v44 }
 0x89f   : > { %1557 = vmatpush3.bf16.msra.mxu0 %v984_v6  ;;  %1558 = vmatprep.mubr.msk.bf16.mxu0 %vm1924_vm0, %v1923_v0 }
 0x8a4   : > { %v1690_v9 = vpop.eup %1689 }
 0x8a5   : > { %v976_v10 = vmul.f32 %v1690_v9, %v1688_v7 }
 0x8a7   : > { %v977_v12 = vpack.c.bf16 %v976_v10, %v976_v10 }
 0x8a9   : > { %1541 = vmatmul.mubr.msk.bf16.vlgmr.msra.gmra.mrb[16].mxu1 %vm537_vm4, %v977_v12 }
 0x8aa   : > { %1551 = vmatpush3.bf16.xpose.msra.mxu1 %v923_v47  ;;  %1552 = vmatprep.mubr.msk.bf16.mxu1 %vm1924_vm0, %v1923_v0 }
 0x8ab   : > { %1562 = vmatprep.subr.bf16.mxu1 %v1923_v0 }
 0x8b1   : > { %1553 = vmatmul.mubr.msk.bf16.vlgmr.msra.gmra.mrb[20].mxu1 %vm559_vm2, %v1072_v36 }
 0x8b2   : > { %1566 = vmatprep.mubr.msk.bf16.mxu1 %vm1924_vm0, %v1923_v0  ;;  %1563 = vmatpush3.bf16.msra.mxu1 %v1677_v41 }
 0x8b3   : > { %1564 = vmatprep.subr.bf16.mxu1 %v1923_v0 }
 0x8b6   : > { %1565 = vmatpush3.bf16.msra.mxu1 %v1678_v42 }
 0x971   : > { %v1065_v13 = vpop.f32.mrb[20].mxu0 }
 0x972   : > { %v1548_v14 = vpop.f32.mrb[21].mxu0 }
 0x973   : > { %v1068_v15 = vpop.f32.mrb[22].mxu0 }
 0x974   : > { %v1549_v16 = vpop.f32.mrb[23].mxu0 }
 0x97c   : > { %v1020_v17 = vpop.f32.mrb[16].mxu1 }
 0x97d   : > { %v1542_v19 = vpop.f32.mrb[17].mxu1 }
 0x97e   : > { %v1023_v20 = vpop.f32.mrb[18].mxu1 }
 0x97f   : > { %v1543_v21 = vpop.f32.mrb[19].mxu1 }
 0x984   : > { %v1110_v22 = vpop.f32.mrb[20].mxu1 }
 0x985   : > { %v1111_v23 = vadd.f32 %v1110_v22, %v1065_v13  ;;  %v1554_v24 = vpop.f32.mrb[21].mxu1 }
 0x986   : > { %v1113_v25 = vpop.f32.mrb[22].mxu1 }
 0x987   : > { %v1555_v30 = vpop.f32.mrb[23].mxu1  ;;  %v1116_v31 = vadd.f32 %v1111_v23, %v2278_v52 }
 0x989   : > { %v1117_v32 = vsel %vm537_vm4, %v1116_v31, -inf }
 0x98a   : > { %1118 = vmax.xlane.f32.xlu1 %v1117_v32 }
 0x99b   : > { %1177 = vrot.lane.b32.xlu1 %v1020_v17, %s1929_s24  ;;  %s400_s24 = scalar_lea.vmem [#allocation11], %s2189_s20 }
 0x99c   : > { %s1281_s22 = sshll.u32 %s400_s24, 4  ;;  %s1282_s22 = int_to_ptr.vmem [resolvable:$true] %s1281_s22 }
 0x99d   : > { %s1809_s21 = scalar_lea.vmem %s1282_s22, 128  ;;  %p1816_p12 = scmp.lt.s32.totalorder %s1282_s22, %s1814_s16 }
 0x99e   : > { %p1810_p10 = scmp.ne.s32.totalorder %s1282_s22, %s1809_s21  ;;  %p1817_p2 = scmp.lt.s32.totalorder %s1815_s27, %s1809_s21 }
 0x9a0   : > { %p1811_p3 = pnand %p1810_p10, %p2141_p5  ;;  %p1818_p1 = por %p1817_p2, %p1816_p12 }
 0x9a2   : > { %p1812_p7 = pneg %p1811_p3 }
 0x9a4   : > { %p1819_p4 = pnand %p1818_p1, %p1812_p7 }
 0xa17   : > { %v1119_v33 = vpop.xlane.xlu1 %1118 }
 0xa18   : > { %v1120_v34 = vsub.f32 %v1116_v31, %v1119_v33 }
 0xa1a   : > { %v1121_v35 = vmul.f32 1.442695, %v1120_v34 }
 0xa1b   : > { %v1178_v47 = vpop.permute.xlu1 %1177 }
 0xa1c   : > { %1691 = vpow2.f32 %v1121_v35 }
 0xa26   : > { %v1692_v37 = vpop.eup %1691 }
 0xa27   : > { %v1123_v38 = vsel %vm537_vm4, %v1692_v37, 0.0 }
 0xa28   : > { %1124 = vadd.xlane.f32.xlu0 %v1123_v38 }
 0xa3e   : > { %1173 = vrot.lane.b32.xlu0 %v2328_v53, %s1927_s28  ;;  %s1943_s28 = smov 24  }
 0xa42   : > { %526 = vrot.lane.b32.xlu0 %v2242_v27, %s1931_s17 }
 0xa46   : > { %534 = vrot.lane.b32.xlu0 %v2222_v11, %s1931_s17 }
 0xab5   : > { %v1125_v52 = vpop.xlane.xlu0 %1124 }
 0xab6   : > { %1693 = vrcp.f32 %v1125_v52 }
 0xab9   : > { %v1174_v11 = vpop.permute.xlu0 %1173 }
 0xaba   : > { %v1184_v29 = vsel %vm537_vm4, %v2304_v18, %v1174_v11 }
 0xabb   : > { %v1185_v48 = vsel %vm539_vm6, %v1184_v29, %v1178_v47 }
 0xabd   : > { %v527_v0 = vpop.permute.xlu0 %526 }
 0xac0   : > { %v1694_v39 = vpop.eup %1693 }
 0xac1   : > { %v1127_v28 = vmul.f32 %v1694_v39, %v1692_v37  ;;  %v535_v53 = vpop.permute.xlu0 %534 }
 0xac3   : > { %v1128_v40 = vpack.c.bf16 %v1127_v28, %v1127_v28 }
 0xac5   : > { %1559 = vmatmul.mubr.msk.bf16.vlgmr.msra.gmra.mrb[24].mxu0 %vm537_vm4, %v1128_v40 }
 0xb98   : > { %v1166_v43 = vpop.f32.mrb[24].mxu0 }
 0xb99   : > { %1181 = vrot.lane.b32.xlu1 %v1166_v43, %s1943_s28  ;;  %v1560_v27 = vpop.f32.mrb[25].mxu0 }
 0xb9a   : > { %v1169_v45 = vpop.f32.mrb[26].mxu0 }
 0xb9b   : > { %v1561_v46 = vpop.f32.mrb[27].mxu0 }
 0xb9d   : > { %530 = vrot.lane.b32.xlu1 %v2240_v26, %s1931_s17  ;;  %s1448_s17 = sshll.u32 %s2017_s13, 7 }
 0xb9e   : > { %s2374_s19 = scalar_lea.hbm %s2454_s9, %s1448_s17 }
 0xc0b   : > { %v1182_v49 = vpop.permute.xlu1 %1181 }
 0xc0c   : > { %v1187_v50 = vsel %vm1186_vm7, %v1185_v48, %v1182_v49 }
 0xc0d   : > { %v1188_v51 = vpack.c.bf16 %v1187_v50, %v1187_v50 }
 0xc0f   : > { %1567 = vmatmul.mubr.msk.bf16.vlgmr.msra.gmra.mrb[24].mxu1 %vm427_vm1, %v1188_v51  ;;  %v531_v26 = vpop.permute.xlu1 %530 }
 0xc10   : > { %v538_v54 = vsel %vm537_vm4, %v527_v0, %v531_v26 }
 0xc11   : > { %v540_v55 = vsel %vm539_vm6, %v538_v54, %v535_v53 }
 0xc12   : > { %541 = vst.msk [vmem:[%s400_s24] sm:$0xff] %vm427_vm1, %v540_v55 }
 0xc13   : > { %1822 = shalt.err (!%p1819_p4)
}
 0xc14   : > { %s1823_s15 = scalar_lea.hbm %s2374_s19, 128  ;;  %s1827_s18 = scalar_lea.hbm %s2454_s9, 256 }
 0xc15   : > { %p1824_p0 = scmp.ne.s32.totalorder %s2374_s19, %s1823_s15  ;;  %p1828_p8 = scmp.lt.u32.totalorder %s2374_s19, %s2454_s9 }
 0xc16   : > { %p1829_p13 = scmp.lt.u32.totalorder %s1827_s18, %s1823_s15  ;;  %p1831_p10 = scmp.lt.u32.totalorder %s1823_s15, %s2374_s19 }
 0xc17   : > { %p1825_p9 = pnand %p1824_p0, %p2141_p5 }
 0xc18   : > { %p1830_p6 = por %p1829_p13, %p1828_p8 }
 0xc19   : > { %p1826_p11 = pneg %p1825_p9 }
 0xc1a   : > { %p1832_p3 = por %p1831_p10, %p1830_p6 }
 0xc1c   : > { %p1833_p7 = pnand %p1832_p3, %p1826_p11 }
 0xc1e   : > { %1836 = shalt.err (!%p1833_p7)
}
 0xc1f   : > { %1585 = dma.vmem_to_hbm [thread:$0]  (%p2141_p5), %s1282_s22, 128, %s2374_s19, %s1255_s29  }
 0xc20   : > { %s393_s21 = scalar_lea.vmem [#allocation10], %s2189_s20  ;;  %s2478_s24 = sld [smem:[#allocation20_spill]] }
 0xc21   : > { %s1268_s16 = sshll.u32 %s393_s21, 4  ;;  %s1250_s15 = scalar_lea.sflag [#allocation4], %s2186_s25  ;;  %s2402_s16 = int_to_ptr.vmem [resolvable:$true] %s1268_s16 }
 0xc22   : > { %s1837_s19 = scalar_lea.vmem %s2402_s16, 128  ;;  %s1945_s13 = smov [#allocation10]  }
 0xc23   : > { %p1838_p12 = scmp.ne.s32.totalorder %s2402_s16, %s1837_s19  ;;  %s1841_s20 = sshll.u32 %s1945_s13, 4  ;;  %s1842_s20 = int_to_ptr.vmem [resolvable:$false] %s1841_s20 }
 0xc24   : > { %p1844_p4 = scmp.lt.s32.totalorder %s2402_s16, %s1842_s20 }
 0xc25   : > { %p1839_p2 = pnand %p1838_p12, %p2141_p5 }
 0xc26   : > { %s2400_s18 = scalar_lea.hbm %s2478_s24, %s1448_s17  ;;  %s1843_s17 = scalar_lea.vmem %s1842_s20, 256 }
 0xc27   : > { %p1840_p1 = pneg %p1839_p2  ;;  %p1845_p0 = scmp.lt.s32.totalorder %s1843_s17, %s1837_s19 }
 0xc29   : > { %p1846_p9 = por %p1845_p0, %p1844_p4 }
 0xc2b   : > { %p1847_p11 = pnand %p1846_p9, %p1840_p1 }
 0xce2   : > { %v1242_v18 = vpop.f32.mrb[24].mxu1 }
 0xce3   : > { %1248 = vst.msk [vmem:[%s393_s21] sm:$0xff] %vm427_vm1, %v1242_v18  ;;  %v1568_v56 = vpop.f32.mrb[25].mxu1 }
 0xce4   : > { %v1245_v57 = vpop.f32.mrb[26].mxu1 }
 0xce5   : > { %1850 = shalt.err (!%p1847_p11)
}
 0xce6   : > { %s1851_s25 = scalar_lea.hbm %s2400_s18, 128  ;;  %s1855_s23 = scalar_lea.hbm %s2478_s24, 256 }
 0xce7   : > { %p1852_p8 = scmp.ne.s32.totalorder %s2400_s18, %s1851_s25  ;;  %p1856_p10 = scmp.lt.u32.totalorder %s2400_s18, %s2478_s24 }
 0xce8   : > { %p1857_p3 = scmp.lt.u32.totalorder %s1855_s23, %s1851_s25  ;;  %p1859_p12 = scmp.lt.u32.totalorder %s1851_s25, %s2400_s18 }
 0xce9   : > { %p1853_p13 = pnand %p1852_p8, %p2141_p5 }
 0xcea   : > { %p1858_p7 = por %p1857_p3, %p1856_p10 }
 0xceb   : > { %p1854_p6 = pneg %p1853_p13 }
 0xcec   : > { %p1860_p2 = por %p1859_p12, %p1858_p7 }
 0xcee   : > { %p1861_p1 = pnand %p1860_p2, %p1854_p6 }
 0xcf0   : > { %1864 = shalt.err (!%p1861_p1)
}
 0xcf1   : > { %1584 = dma.vmem_to_hbm [thread:$0]  (%p2141_p5), %s2402_s16, 128, %s2400_s18, %s1250_s15   ;;  %v1569_v58 = vpop.f32.mrb[27].mxu1 }
 0xcf2 PF: > { %s2479_s27 = sld [smem:[#allocation18_spill]]  ;;  %s2480_s28 = sld [smem:[#allocation19_spill]] }
 0xcf3   : > { %p2482_p0 = scmp.ge.s32.totalorder %s1915_s12, 2 }
 0xcf8   : > { %s1293_s19 = sand.u32 1, %s2479_s27   ;;  %p2481_p4 = scmp.ne.s32.totalorder %s2480_s28, 0 }
 0xcf9   : > { %s1294_s13 = scalar_lea.sflag [#allocation4], %s1293_s19 }
 0xcfa   : > { %p1603_p9 = pnand %p2482_p0, %p2481_p4 }
 0xcfc   : > { %1894 = dma.done.wait (!%p1603_p9), %s1294_s13, 128  }
 0xcfd   : > { %1896 = vsyncadd (!%p1603_p9), %s1294_s13, 4294967168  ;;  %s1303_s20 = scalar_lea.sflag [#allocation12], %s1293_s19 }
 0xcfe   : > { %1898 = dma.done.wait (!%p1603_p9), %s1303_s20, 128  }
 0xcff   : > { %1900 = vsyncadd (!%p1603_p9), %s1303_s20, 4294967168  ;;  %p28_p5 = scmp.ge.s32.totalorder %s2127_s14, 4   ;;  %s2483_s30 = smov %s1907_s10 }
 0xd00   : > { %s2484_s10 = smov %s1911_s11  ;;  %s2485_s11 = smov %s2137_s8 }
 0xd01   : > { %s2486_s12 = smov %s2127_s14  ;;  %30 = sbr.rel (!%p28_p5) target bundleno = 11 (0xb), region = 126 }
 0xd08   :  { %1308 = vsyncpa [#allocation3], 1 }
 0xd09   :  { %1310 = vsyncpa [#allocation3 + $0x1], 1 }
 0xd0a   :  { %1311 = vsyncpa [#allocation6], 1 }
 0xd0b   :  { %1312 = vsyncpa [#allocation9], 1 }
 0xd0c   :  { %1313 = vsyncpa [#allocation4], 1 }
 0xd0d   :  { %1315 = vsyncpa [#allocation4 + $0x1], 1 }
 0xd0e   :  { %1316 = vsyncpa [#allocation12], 1 }
 0xd0f   :  { %1318 = vsyncpa [#allocation12 + $0x1], 1 }

</bundles_post_ra>
